<compile_context>
chip_gen: v7x
topology: tpu7x:2x2x1
jax: 0.10.0
libtpu: 0.0.40
codegen_flags: <defaults>
</compile_context>

<pallas_src>
import numpy as np
import jax
import jax.numpy as jnp
from jax.experimental import pallas as pl
from jax.experimental.pallas import tpu as pltpu


# ---------------------------------------------------------------------------
# Host-side precompute (equivalent to the module's __init__ buffers).
# ---------------------------------------------------------------------------
def _rodrigues(rvec):
    theta = np.linalg.norm(rvec)
    if theta < 1e-12:
        return np.eye(3)
    k = rvec / theta
    Km = np.array([[0.0, -k[2], k[1]],
                   [k[2], 0.0, -k[0]],
                   [-k[1], k[0], 0.0]])
    return np.eye(3) + np.sin(theta) * Km + (1.0 - np.cos(theta)) * (Km @ Km)


def build_sampling_matrix(cube_length, equ_h):
    """Returns S (float32, [equ_h*equ_w, 6*L*L]) s.t. equi_flat = x_flat @ S.T."""
    L = cube_length
    equ_w = equ_h * 2
    theta = (np.arange(equ_w) / (equ_w - 1) - 0.5) * 2 * np.pi
    phi = (np.arange(equ_h) / (equ_h - 1) - 0.5) * np.pi
    theta, phi = np.meshgrid(theta, phi)
    x = np.sin(theta) * np.cos(phi)
    y = np.sin(phi)
    z = np.cos(theta) * np.cos(phi)
    xyz = np.concatenate([x[..., None], y[..., None], z[..., None]], axis=-1)

    planes = np.asarray([[0, 0, 1, 1], [0, 1, 0, -1], [0, 0, 1, -1],
                         [1, 0, 0, 1], [1, 0, 0, -1], [0, 1, 0, 1]], dtype=np.float64)
    r_lst = np.array([[0, 1, 0], [0.5, 0, 0], [0, 0, 0],
                      [0, 0.5, 0], [0, -0.5, 0], [-0.5, 0, 0]]) * np.pi
    f = cube_length / 2.0
    Kmat = np.array([[f, 0, (cube_length - 1) / 2.0],
                     [0, f, (cube_length - 1) / 2.0],
                     [0, 0, 1]])
    R_lst = [_rodrigues(r) for r in r_lst]

    abc = planes[:, :-1]
    with np.errstate(divide="ignore", invalid="ignore"):
        depth = -planes[:, 3][None, None, :] / np.dot(xyz, abc.T)
    depth[depth < 0] = np.inf
    arg = np.argmin(depth, axis=-1)          # same first-min tie-break as the module
    depth = np.min(depth, axis=-1)
    pts = depth[..., None] * xyz

    P = equ_h * equ_w
    Q = 6 * L * L
    S = np.zeros((P, Q), dtype=np.float32)

    for i in range(6):
        mask = (arg == i)
        pidx = np.nonzero(mask.reshape(-1))[0]            # row-major pixel order
        pts_i = pts[mask].reshape(-1, 3)
        XY = (pts_i @ R_lst[i].T) @ Kmat.T
        XY = np.clip(XY[:, :2] / XY[:, 2:], 0, L - 1)     # (N_i, 2) pixel coords (x, y)

        xs = XY[:, 0]
        ys = XY[:, 1]
        x0 = np.floor(xs).astype(np.int64)
        y0 = np.floor(ys).astype(np.int64)
        x1 = np.minimum(x0 + 1, L - 1)
        y1 = np.minimum(y0 + 1, L - 1)
        wx = (xs - x0).astype(np.float32)
        wy = (ys - y0).astype(np.float32)
        base = i * L * L
        np.add.at(S, (pidx, base + y0 * L + x0), (1 - wy) * (1 - wx))
        np.add.at(S, (pidx, base + y0 * L + x1), (1 - wy) * wx)
        np.add.at(S, (pidx, base + y1 * L + x0), wy * (1 - wx))
        np.add.at(S, (pidx, base + y1 * L + x1), wy * wx)
    return S


def _round_up(v, m):
    return ((v + m - 1) // m) * m


def prepare_s_t(S, dtype=jnp.bfloat16):
    """S: (P, Q) float32 host matrix -> (Q, P_pad) device array in `dtype`.
    P is padded to a multiple of 128 (zero columns) for lane-dense output tiles;
    bilinear weights in [0,1] tolerate bf16 easily."""
    P, Q = S.shape
    P_pad = _round_up(P, 128)
    S_T = np.zeros((Q, P_pad), dtype=np.float32)
    S_T[:, :P] = S.T
    return jnp.asarray(S_T).astype(dtype)


# ---------------------------------------------------------------------------
# Pallas kernels
# ---------------------------------------------------------------------------
def _c2e_kernel_single(x_ref, s_ref, o_ref):
    # X pinned whole in VMEM -> full contraction in one step, no scratch accumulator.
    o_ref[...] = jnp.dot(x_ref[...], s_ref[...], preferred_element_type=jnp.float32)


def _c2e_kernel_acc(x_ref, s_ref, o_ref):
    # Fallback: contraction axis split; accumulate directly into the resident out block.
    @pl.when(pl.program_id(1) == 0)
    def _():
        o_ref[...] = jnp.zeros_like(o_ref)

    o_ref[...] += jnp.dot(x_ref[...], s_ref[...], preferred_element_type=jnp.float32)


# ---------------------------------------------------------------------------
# Wrapper
# ---------------------------------------------------------------------------
_VMEM_BUDGET = 24 * 1024 * 1024       # pipeline-buffer budget, conservative for v7x (64 MiB)
_VMEM_LIMIT_BYTES = 48 * 1024 * 1024  # scoped VMEM limit with headroom (ok on v5e/v6e/v7x)


def _divisor_tiles(dim, mult=128):
    """Multiples of `mult` dividing `dim` (dim must be a multiple of mult), descending."""
    return [t for t in range(dim, 0, -mult) if dim % t == 0]


def _buf_bytes(m, tn, tk):
    # double-buffered bf16 inputs + double-buffered f32 output block
    return 2 * (m * tk) * 2 + 2 * (tk * tn) * 2 + 2 * (m * tn) * 4


def cube2equirec_forward(x, s_t, cube_length, equ_h):
    """x: (6*equ_count, C, L, L) float32; s_t: (6*L*L, P_pad) bfloat16 (from prepare_s_t)."""
    B, C, L, _ = x.shape
    assert B % 6 == 0 and L == cube_length
    E = B // 6
    equ_w = equ_h * 2
    P = equ_h * equ_w
    Q = 6 * L * L
    Q_s, P_pad = s_t.shape
    assert Q_s == Q and P_pad % 128 == 0 and P_pad >= P

    # Glue: per (equ, channel) row, concatenate the 6 faces (face, y, x) row-major.
    # (Tiny HBM permute; the hot path below does not re-touch it.)
    X = (x.reshape(E, 6, C, L * L)
           .transpose(0, 2, 1, 3)
           .reshape(E * C, Q)
           .astype(jnp.bfloat16))
    M = E * C

    # Lane-dense output tiles; keep >= 2 tiles along n so v7x megacore can split work.
    cand_tn = _divisor_tiles(P_pad)
    if P_pad >= 256:
        cand_tn = [t for t in cand_tn if P_pad // t >= 2] or cand_tn

    # Path 1: pin the whole X row-block in VMEM (tk == Q) -> X DMA'd once, 1-D grid.
    tn = next((t for t in cand_tn if _buf_bytes(M, t, Q) <= _VMEM_BUDGET), None)

    if tn is not None:
        out_padded = pl.pallas_call(
            _c2e_kernel_single,
            out_shape=jax.ShapeDtypeStruct((M, P_pad), jnp.float32),
            grid_spec=pltpu.PrefetchScalarGridSpec(
                num_scalar_prefetch=0,
                grid=(P_pad // tn,),
                in_specs=[
                    pl.BlockSpec((M, Q), lambda n: (0, 0)),    # constant block: fetched once
                    pl.BlockSpec((Q, tn), lambda n: (0, n)),   # dominant bf16 stream
                ],
                out_specs=pl.BlockSpec((M, tn), lambda n: (0, n)),
            ),
            compiler_params=pltpu.CompilerParams(
                dimension_semantics=("parallel",),
                vmem_limit_bytes=_VMEM_LIMIT_BYTES),
        )(X, s_t)
    else:
        # Path 2: split the contraction axis (padded to a multiple of 128).
        Q_pad = _round_up(Q, 128)
        if Q_pad != Q:
            X = jnp.pad(X, ((0, 0), (0, Q_pad - Q)))
            s_t = jnp.pad(s_t, ((0, Q_pad - Q), (0, 0)))
        cand_tk = _divisor_tiles(Q_pad)
        choice = None
        for t_n in cand_tn:
            for t_k in cand_tk:
                if _buf_bytes(M, t_n, t_k) <= _VMEM_BUDGET:
                    choice = (t_n, t_k)
                    break
            if choice is not None:
                break
        if choice is None:
            choice = (128, 128)  # last resort; still layout-legal
        tn, tk = choice

        out_padded = pl.pallas_call(
            _c2e_kernel_acc,
            out_shape=jax.ShapeDtypeStruct((M, P_pad), jnp.float32),
            grid_spec=pltpu.PrefetchScalarGridSpec(
                num_scalar_prefetch=0,
                grid=(P_pad // tn, Q_pad // tk),               # reduction axis last
                in_specs=[
                    pl.BlockSpec((M, tk), lambda n, k: (0, k)),
                    pl.BlockSpec((tk, tn), lambda n, k: (k, n)),
                ],
                out_specs=pl.BlockSpec((M, tn), lambda n, k: (0, n)),
            ),
            compiler_params=pltpu.CompilerParams(
                dimension_semantics=("parallel", "arbitrary"),
                vmem_limit_bytes=_VMEM_LIMIT_BYTES),
        )(X, s_t)

    return out_padded[:, :P].reshape(E, C, equ_h, equ_w)


# ---------------------------------------------------------------------------
if __name__ == "__main__":
    cube_length = 16
    equ_h = 16
    equ_w = equ_h * 2
    equ_count = 2
    C = 4
    L = cube_length

    key = jax.random.PRNGKey(0)
    x = jax.random.normal(key, (6 * equ_count, C, L, L), dtype=jnp.float32)

    S = build_sampling_matrix(cube_length, equ_h)   # (P, Q) float32, host
    s_t = prepare_s_t(S)                            # (Q, P_pad) bf16, device

    out = cube2equirec_forward(x, s_t, cube_length, equ_h)
    out = jax.block_until_ready(out)
    assert out.shape == (equ_count, C, equ_h, equ_w)
    assert out.dtype == jnp.float32

    # ---- reference checks ---------------------------------------------------
    Q = 6 * L * L
    P = equ_h * equ_w
    X_np = (np.asarray(x).reshape(equ_count, 6, C, L * L)
              .transpose(0, 2, 1, 3)
              .reshape(equ_count * C, Q))

    # (a) tight check vs the same bf16-quantized operands in f32 host math
    X_q = np.asarray(jnp.asarray(X_np).astype(jnp.bfloat16).astype(jnp.float32))
    S_T_q = np.asarray(s_t.astype(jnp.float32))[:, :P]
    ref_q = (X_q @ S_T_q).reshape(equ_count, C, equ_h, equ_w)
    assert np.allclose(np.asarray(out), ref_q, atol=2e-3, rtol=2e-3)

    # (b) loose check vs the exact float32 linear map (module semantics)
    ref_f32 = (X_np @ S.T).reshape(equ_count, C, equ_h, equ_w)
    assert np.allclose(np.asarray(out), ref_f32, atol=5e-2, rtol=5e-2)

    print("KERNEL_OK")
</pallas_src>

<mosaic_0001>
module attributes {stable_mosaic.version = 11 : i64} {
  func.func @_c2e_kernel_single(%arg0: i32, %arg1: memref<8x1536xbf16, #tpu.memory_space<vmem>>, %arg2: memref<1536x256xbf16, #tpu.memory_space<vmem>>, %arg3: memref<8x256xf32, #tpu.memory_space<vmem>>) attributes {dimension_semantics = [#tpu.dimension_semantics<parallel>], iteration_bounds = array<i64: 2>, scalar_prefetch = 0 : i64, scratch_operands = 0 : i64, tpu.core_type = #tpu.core_type<tc>, window_params = [{pipeline_mode = #tpu.pipeline_mode<synchronous>, transform_indices = @transform_0, window_bounds = array<i64: 8, 1536>}, {transform_indices = @transform_1, window_bounds = array<i64: 1536, 256>}, {transform_indices = @transform_2, window_bounds = array<i64: 8, 256>}]} {
    %c0 = arith.constant 0 : index
    %c0_0 = arith.constant 0 : index
    %0 = vector.load %arg1[%c0, %c0_0] : memref<8x1536xbf16, #tpu.memory_space<vmem>>, vector<8x1536xbf16>
    %c0_1 = arith.constant 0 : index
    %c0_2 = arith.constant 0 : index
    %1 = vector.load %arg2[%c0_1, %c0_2] : memref<1536x256xbf16, #tpu.memory_space<vmem>>, vector<1536x256xbf16>
    %cst = arith.constant dense<0.000000e+00> : vector<8x256xf32>
    %2 = tpu.matmul %0, %1, %cst {dimension_numbers = #tpu.dot_dimension_numbers<[1], [0], [0], [1], [0, 0, 1, 1], [], []>} : vector<8x1536xbf16>, vector<1536x256xbf16>, vector<8x256xf32> -> vector<8x256xf32>
    %c0_3 = arith.constant 0 : index
    %c0_4 = arith.constant 0 : index
    %3 = vector.load %arg3[%c0_3, %c0_4] : memref<8x256xf32, #tpu.memory_space<vmem>>, vector<8x256xf32>
    tpu.vector_store %arg3[%c0_3, %c0_4], %2 {strides = array<i32>} : memref<8x256xf32, #tpu.memory_space<vmem>>, vector<8x256xf32>,
    return
  }
  func.func @transform_0(%arg0: i32) -> (i32, i32) {
    %c0_i32 = arith.constant 0 : i32
    %c0_i32_0 = arith.constant 0 : i32
    %c0_i32_1 = arith.constant 0 : i32
    return %c0_i32, %c0_i32_0 : i32, i32
  }
  func.func @transform_1(%arg0: i32) -> (i32, i32) {
    %c0_i32 = arith.constant 0 : i32
    %c0_i32_0 = arith.constant 0 : i32
    return %c0_i32, %arg0 : i32, i32
  }
  func.func @transform_2(%arg0: i32) -> (i32, i32) {
    %c0_i32 = arith.constant 0 : i32
    %c0_i32_0 = arith.constant 0 : i32
    return %c0_i32, %arg0 : i32, i32
  }
}

</mosaic_0001>

<bundles_post_ra>
// kernel: tpu_custom_call.1
= control target key start
LH: loop header
LB: loop body
LE: loop exit
PB: predicated region body
PF: predicated region fallthrough
CT: control target
= control target key end

     0   :  { %7 = vsyncpa [#allocation3], 0  ;;  %s2888_s0 = inlined_call_operand.hbm [shape: bf16[8,1536], index: 0, kind: input, shape index: {}]   ;;  %s2889_s1 = inlined_call_operand.hbm [shape: bf16[1536,512], index: 1, kind: input, shape index: {}]   ;;  %s2890_s2 = inlined_call_operand.hbm [shape: f32[8,512], index: 2, kind: output, shape index: {}]  }
   0x1   :  { %8 = vsyncpa [#allocation6], 0 }
   0x2   :  { %10 = vsyncpa [#allocation6 + $0x1], 0 }
   0x3   :  { %11 = vsyncpa [#allocation4], 0 }
   0x4   :  { %13 = vsyncpa [#allocation4 + $0x1], 0  ;;  %s2473_s9 = smov 0   ;;  %s2475_s10 = smov 0  }
   0x5   :  { %s2477_s11 = smov 0   ;;  %s2479_s12 = smov 0  }
   0x6 LB: > { %s2494_s13 = sadd.s32 4294967295, %s2450_s12   ;;  %s1722_s14 = sadd.s32 4294967294, %s2450_s12   ;;  %s2450_s12 = sphi %s2479_s12, %s2915_s12   ;;  %s2446_s11 = sphi %s2477_s11, %s2914_s11   ;;  %s2442_s10 = sphi %s2475_s10, %s2913_s10   ;;  %s2438_s9 = sphi %s2473_s9, %s2912_s9  }
   0x7   : > { %s2498_s15 = sadd.s32 1, %s2450_s12   ;;  %s47_s16 = sadd.s32 1, %s2446_s11 }
   0x8   : > { %s44_s17 = ssub.s32 %s2450_s12, %s2498_s15  ;;  %p54_p0 = scmp.ne.s32.totalorder %s2446_s11, %s2442_s10 }
   0x9   : > { %p45_p1 = scmp.eq.s32.totalorder %s44_s17, 0  ;;  %p55_p2 = scmp.eq.s32.totalorder %s2450_s12, 0 }
   0xa   : > { %p60_p3 = scmp.ne.s32.totalorder %s2442_s10, %s2438_s9  ;;  %p2891_p4 = scmp.eq.s32.totalorder %s2494_s13, 0 }
   0xb   : > { %s2510_s18 = scalar_select %p45_p1, %s2446_s11, %s47_s16  }
   0xc   : > { %p2512_p5 = por %p55_p2, %p54_p0  ;;  %p2518_p6 = por %p2891_p4, %p60_p3 }
   0xd   : > { %p84_p7 = scmp.eq.s32.totalorder %s2494_s13, 1  ;;  %p90_p8 = scmp.eq.s32.totalorder %s1722_s14, 1 }
   0xe   : > { %s2897_s20 = scalar_select %p2518_p6, 1, 0 }
   0xf   : > { %p1723_p9 = scmp.ge.s32.totalorder %s2450_s12, 1  ;;  %p97_p10 = scmp.lt.s32.totalorder %s2450_s12, 3 }
  0x10   : > { %p2525_p11 = por %p84_p7, %p54_p0  ;;  %p2529_p12 = por %p90_p8, %p60_p3 }
  0x11   : > { %p2533_p13 = pnand %p1723_p9, %p97_p10  ;;  %s2452_s24 = smov [#allocation2]  }
  0x12   : > { %s2898_s21 = scalar_select %p2525_p11, 1, 0 }
  0x13   : > { %s2899_s22 = scalar_select %p2529_p12, 1, 0 }
  0x14   : > { %s2900_s23 = scalar_select %p2533_p13, 1, 0 }
  0x15   : > { %p1970_p2 = pneg %p2533_p13  ;;  %s110_s25 = sshll.u32 %s2452_s24, 4  ;;  %s111_s25 = int_to_ptr.vmem [resolvable:$true] %s110_s25 }
  0x16   : > { %p1983_p4 = scmp.lt.s32.totalorder %s2450_s12, 2  ;;  %p2901_p0 = scmp.eq.s32.totalorder %s2494_s13, 0 }
  0x17   : > { %s121_s27 = sand.u32 1, %s2446_s11   ;;  %s2322_s4 = scalar_lea.hbm %s2888_s0, 768 }
  0x18   : > { %p2543_p7 = pnand %p1970_p2, %p2901_p0  ;;  %p2550_p3 = pnand %p1983_p4, %p2512_p5 }
  0x19   : > { %s1960_s29 = smul.u32 1536, %s121_s27  ;;  %p2323_p8 = scmp.ne.s32.totalorder %s2888_s0, %s2322_s4 }
  0x1a   : > { %s2903_s28 = scalar_select %p2550_p3, 1, 0 }
  0x1b   : > { %p2324_p9 = pneg %p2543_p7  ;;  %p2329_p4 = scmp.lt.u32.totalorder %s2322_s4, %s2888_s0 }
  0x1d   : > { %p2325_p10 = pnand %p2324_p9, %p2323_p8 }
  0x1f   : > { %p2326_p2 = pneg %p2325_p10 }
  0x21   : > { %p2331_p5 = pnand %p2329_p4, %p2326_p2 }
  0x23   : > { %2334 = shalt.err (!%p2331_p5)
}
  0x24   : > { %s2335_s14 = scalar_lea.vmem %s111_s25, 768  ;;  %p2343_p11 = scmp.lt.s32.totalorder %s111_s25, %s111_s25 }
  0x25   : > { %p2336_p0 = scmp.ne.s32.totalorder %s111_s25, %s2335_s14  ;;  %p2344_p6 = scmp.lt.s32.totalorder %s2335_s14, %s2335_s14 }
  0x27   : > { %p2338_p1 = pnand %p2336_p0, %p2324_p9  ;;  %p2345_p13 = por %p2344_p6, %p2343_p11 }
  0x29   : > { %p2339_p12 = pneg %p2338_p1 }
  0x2b   : > { %p2346_p3 = pnand %p2345_p13, %p2339_p12 }
  0x2d   : > { %2349 = shalt.err (!%p2346_p3)
}
  0x2e   : > { %1973 = dma.hbm_to_vmem [thread:$0]  (!%p2543_p7), %s2888_s0, 768, %s111_s25, [#allocation3]  }
  0x2f   : > { %s1940_s19 = sshll.u32 %s2450_s12, 7  ;;  %s125_s24 = scalar_lea.vmem [#allocation5], %s1960_s29 }
  0x30   : > { %s132_s30 = sshll.u32 %s125_s24, 4  ;;  %s2574_s5 = scalar_lea.hbm %s2889_s1, %s1940_s19  ;;  %s2576_s30 = int_to_ptr.vmem [resolvable:$true] %s132_s30 }
  0x31   : > { %s2578_s26 = scalar_lea.sflag [#allocation6], %s121_s27  ;;  %s2350_s6 = scalar_lea.hbm %s2574_s5, 24576 }
  0x32   : > { %p2351_p6 = scmp.ne.s32.totalorder %s2574_s5, %s2350_s6  ;;  %p2904_p11 = scmp.ne.s32.totalorder %s2903_s28, 0 }
  0x33   : > { %s2355_s7 = scalar_lea.hbm %s2889_s1, 49152  ;;  %p2356_p7 = scmp.lt.u32.totalorder %s2574_s5, %s2889_s1 }
  0x34   : > { %p2352_p12 = pneg %p2904_p11  ;;  %p2357_p3 = scmp.lt.u32.totalorder %s2355_s7, %s2350_s6 }
  0x35   : > { %p2359_p9 = scmp.lt.u32.totalorder %s2350_s6, %s2574_s5 }
  0x36   : > { %p2353_p13 = pnand %p2352_p12, %p2351_p6  ;;  %p2358_p8 = por %p2357_p3, %p2356_p7 }
  0x38   : > { %p2354_p1 = pneg %p2353_p13  ;;  %p2360_p10 = por %p2359_p9, %p2358_p8 }
  0x3a   : > { %p2361_p2 = pnand %p2360_p10, %p2354_p1 }
  0x3c   : > { %2364 = shalt.err (!%p2361_p2)
}
  0x3d   : > { %s2365_s27 = scalar_lea.vmem %s2576_s30, 24576  ;;  %s2453_s16 = smov [#allocation5]  }
  0x3e   : > { %p2366_p4 = scmp.ne.s32.totalorder %s2576_s30, %s2365_s27  ;;  %s2370_s17 = sshll.u32 %s2453_s16, 4  ;;  %s2371_s17 = int_to_ptr.vmem [resolvable:$false] %s2370_s17 }
  0x3f   : > { %s2372_s19 = scalar_lea.vmem %s2371_s17, 49152  ;;  %p2373_p6 = scmp.lt.s32.totalorder %s2576_s30, %s2371_s17 }
  0x40   : > { %p2368_p5 = pnand %p2366_p4, %p2352_p12  ;;  %p2374_p13 = scmp.lt.s32.totalorder %s2372_s19, %s2365_s27 }
  0x42   : > { %p2369_p0 = pneg %p2368_p5  ;;  %p2375_p7 = por %p2374_p13, %p2373_p6 }
  0x44   : > { %p2376_p3 = pnand %p2375_p7, %p2369_p0 }
  0x46   : > { %2379 = shalt.err (!%p2376_p3)
}
  0x47   : > { %s2454_s24 = smov 256   ;;  %s2455_s3 = smov 128  }
  0x48   : > { %s2456_s4 = smov 8   ;;  %p2905_p12 = scmp.ne.s32.totalorder %s2900_s23, 0 }
  0x49   : > { %1977 = dma.hbm_to_vmem [thread:$0]  (!%p2904_p11), %s2574_s5, 24576, %s2576_s30, %s2578_s26, %s2454_s24, %s2455_s3, %s2456_s4  }
  0x4a   : > { %144 = sbr.rel (%p2905_p12) target bundleno = 510 (0x1fe), region = 28  ;;  %p2906_p1 = scmp.eq.s32.totalorder (!%p2905_p12), %s2494_s13, 0 }
  0x51   : > { %2425 = dma.done.wait (%p2906_p1), [#allocation3], 768   ;;  %p2907_p8 = pmov %p2906_p1 }
  0x52   : > { %s2613_s6 = sand.u32 1, %s2442_s10   ;;  %p2908_p11 = scmp.ne.s32.totalorder %s2897_s20, 0 }
  0x53   : > { %2427 = vsyncadd (%p2907_p8), [#allocation3], 4294966528  ;;  %s1961_s25 = smul.u32 1536, %s2613_s6  ;;  %s151_s29 = scalar_lea.sflag [#allocation6], %s2613_s6 }
  0x55   : > { %s2617_s7 = scalar_lea.vmem [#allocation5], %s1961_s25 }
  0x56   : > { %2429 = dma.done.wait (%p2908_p11), %s151_s29, 24576  }
  0x57   : > { %2431 = vsyncadd (%p2908_p11), %s151_s29, 4294942720  ;;  %v2022_v0 = vld [vmem:[%s2617_s7 + $0x4] ss:$8 sps:$4 sm:$0xff]   ;;  %v2026_v2 = vld [vmem:[%s2617_s7] ss:$8 sps:$4 sm:$0xff]   ;;  %s1730_s20 = sshll.u32 %s2613_s6, 4 }
  0x58   : > { %v2024_v1 = vld [vmem:[%s2617_s7 + $0x304] ss:$8 sps:$4 sm:$0xff]   ;;  %1377 = vmatprep.subr.bf16.mxu1 %v2022_v0  ;;  %v2027_v3 = vld [vmem:[%s2617_s7 + $0x300] ss:$8 sps:$4 sm:$0xff]   ;;  %v2028_v4 = vld [vmem:[%s2617_s7 + $0x14] ss:$8 sps:$4 sm:$0xff]  }
  0x59   : > { %1500 = vmatprep.subr.bf16.mxu0 %v2024_v1  ;;  %1378 = vmatpush1.bf16.msra.mxu1 %v2026_v2  ;;  %v2030_v5 = vld [vmem:[%s2617_s7 + $0x314] ss:$8 sps:$4 sm:$0xff]   ;;  %v2032_v6 = vld [vmem:[%s2617_s7 + $0x10] ss:$8 sps:$4 sm:$0xff]   ;;  %v2034_v8 = vld [vmem:[%s2617_s7 + $0x24] ss:$8 sps:$4 sm:$0xff]  }
  0x5a   : > { %1501 = vmatpush1.bf16.msra.mxu0 %v2027_v3  ;;  %1379 = vmatprep.subr.bf16.mxu1 %v2028_v4  ;;  %v2033_v7 = vld [vmem:[%s2617_s7 + $0x310] ss:$8 sps:$4 sm:$0xff]   ;;  %v2036_v9 = vld [vmem:[%s2617_s7 + $0x324] ss:$8 sps:$4 sm:$0xff]   ;;  %v2038_v10 = vld [vmem:[%s2617_s7 + $0x20] ss:$8 sps:$4 sm:$0xff]  }
  0x5b   : > { %1502 = vmatprep.subr.bf16.mxu0 %v2030_v5  ;;  %v2039_v11 = vld [vmem:[%s2617_s7 + $0x320] ss:$8 sps:$4 sm:$0xff]   ;;  %v2040_v12 = vld [vmem:[%s2617_s7 + $0x34] ss:$8 sps:$4 sm:$0xff]   ;;  %v2044_v14 = vld [vmem:[%s2617_s7 + $0x30] ss:$8 sps:$4 sm:$0xff]  }
  0x5c   : > { %v2042_v13 = vld [vmem:[%s2617_s7 + $0x334] ss:$8 sps:$4 sm:$0xff]   ;;  %v2045_v15 = vld [vmem:[%s2617_s7 + $0x330] ss:$8 sps:$4 sm:$0xff]   ;;  %v2046_v16 = vld [vmem:[%s2617_s7 + $0x44] ss:$8 sps:$4 sm:$0xff]  }
  0x5d   : > { %1380 = vmatpush1.bf16.msra.mxu1 %v2032_v6  ;;  %v2048_v17 = vld [vmem:[%s2617_s7 + $0x344] ss:$8 sps:$4 sm:$0xff]   ;;  %v2050_v18 = vld [vmem:[%s2617_s7 + $0x40] ss:$8 sps:$4 sm:$0xff]   ;;  %v2052_v20 = vld [vmem:[%s2617_s7 + $0x54] ss:$8 sps:$4 sm:$0xff]  }
  0x5e   : > { %1503 = vmatpush1.bf16.msra.mxu0 %v2033_v7  ;;  %1381 = vmatprep.subr.bf16.mxu1 %v2034_v8  ;;  %v2051_v19 = vld [vmem:[%s2617_s7 + $0x340] ss:$8 sps:$4 sm:$0xff]   ;;  %v2054_v21 = vld [vmem:[%s2617_s7 + $0x354] ss:$8 sps:$4 sm:$0xff]   ;;  %v2056_v22 = vld [vmem:[%s2617_s7 + $0x50] ss:$8 sps:$4 sm:$0xff]  }
  0x5f   : > { %1504 = vmatprep.subr.bf16.mxu0 %v2036_v9  ;;  %v2057_v23 = vld [vmem:[%s2617_s7 + $0x350] ss:$8 sps:$4 sm:$0xff]   ;;  %v2058_v24 = vld [vmem:[%s2617_s7 + $0x64] ss:$8 sps:$4 sm:$0xff]   ;;  %v2062_v26 = vld [vmem:[%s2617_s7 + $0x60] ss:$8 sps:$4 sm:$0xff]  }
  0x60   : > { %v2060_v25 = vld [vmem:[%s2617_s7 + $0x364] ss:$8 sps:$4 sm:$0xff]   ;;  %v2063_v27 = vld [vmem:[%s2617_s7 + $0x360] ss:$8 sps:$4 sm:$0xff]   ;;  %v2064_v28 = vld [vmem:[%s2617_s7 + $0x74] ss:$8 sps:$4 sm:$0xff]  }
  0x61   : > { %1382 = vmatpush1.bf16.msra.mxu1 %v2038_v10  ;;  %v2066_v29 = vld [vmem:[%s2617_s7 + $0x374] ss:$8 sps:$4 sm:$0xff]   ;;  %v2068_v30 = vld [vmem:[%s2617_s7 + $0x70] ss:$8 sps:$4 sm:$0xff]   ;;  %v2070_v32 = vld [vmem:[%s2617_s7 + $0x84] ss:$8 sps:$4 sm:$0xff]  }
  0x62   : > { %1505 = vmatpush1.bf16.msra.mxu0 %v2039_v11  ;;  %1383 = vmatprep.subr.bf16.mxu1 %v2040_v12  ;;  %v2069_v31 = vld [vmem:[%s2617_s7 + $0x370] ss:$8 sps:$4 sm:$0xff]   ;;  %v2072_v33 = vld [vmem:[%s2617_s7 + $0x384] ss:$8 sps:$4 sm:$0xff]   ;;  %v2074_v34 = vld [vmem:[%s2617_s7 + $0x80] ss:$8 sps:$4 sm:$0xff]  }
  0x63   : > { %1506 = vmatprep.subr.bf16.mxu0 %v2042_v13  ;;  %v2075_v35 = vld [vmem:[%s2617_s7 + $0x380] ss:$8 sps:$4 sm:$0xff]   ;;  %v2076_v36 = vld [vmem:[%s2617_s7 + $0x94] ss:$8 sps:$4 sm:$0xff]   ;;  %v2080_v38 = vld [vmem:[%s2617_s7 + $0x90] ss:$8 sps:$4 sm:$0xff]  }
  0x64   : > { %v2078_v37 = vld [vmem:[%s2617_s7 + $0x394] ss:$8 sps:$4 sm:$0xff]   ;;  %v2081_v39 = vld [vmem:[%s2617_s7 + $0x390] ss:$8 sps:$4 sm:$0xff]   ;;  %v2082_v40 = vld [vmem:[%s2617_s7 + $0xa4] ss:$8 sps:$4 sm:$0xff]  }
  0x65   : > { %1384 = vmatpush1.bf16.msra.mxu1 %v2044_v14  ;;  %v2084_v41 = vld [vmem:[%s2617_s7 + $0x3a4] ss:$8 sps:$4 sm:$0xff]   ;;  %v2086_v42 = vld [vmem:[%s2617_s7 + $0xa0] ss:$8 sps:$4 sm:$0xff]   ;;  %v2088_v44 = vld [vmem:[%s2617_s7 + $0xb4] ss:$8 sps:$4 sm:$0xff]  }
  0x66   : > { %1507 = vmatpush1.bf16.msra.mxu0 %v2045_v15  ;;  %1385 = vmatprep.subr.bf16.mxu1 %v2046_v16  ;;  %v2087_v43 = vld [vmem:[%s2617_s7 + $0x3a0] ss:$8 sps:$4 sm:$0xff]   ;;  %v2090_v45 = vld [vmem:[%s2617_s7 + $0x3b4] ss:$8 sps:$4 sm:$0xff]   ;;  %v2092_v47 = vld [vmem:[%s2617_s7 + $0xb0] ss:$8 sps:$4 sm:$0xff]  }
  0x67   : > { %1508 = vmatprep.subr.bf16.mxu0 %v2048_v17  ;;  %v177_v46 = vld [vmem:[#allocation2] sm:$0xff]  ;;  %v180_v50 = vld [vmem:[#allocation2 + $0x18] sm:$0xff]  ;;  %s1941_s23 = sshll.u32 %s2494_s13, 8  ;;  %s174_s28 = scalar_lea.vmem [#allocation7], %s1730_s20 }
  0x68   : > { %v1732_v48 = vcombine.high %v177_v46, %v177_v46  ;;  %v2093_v49 = vld [vmem:[%s2617_s7 + $0x3b0] ss:$8 sps:$4 sm:$0xff]   ;;  %v2094_v51 = vld [vmem:[%s2617_s7 + $0xc4] ss:$8 sps:$4 sm:$0xff]   ;;  %v1738_v53 = vcombine.high %v180_v50, %v180_v50  ;;  %v2098_v54 = vld [vmem:[%s2617_s7 + $0xc0] ss:$8 sps:$4 sm:$0xff]   ;;  %v1731_v6 = vcombine.low %v177_v46, %v177_v46  ;;  %v1737_v7 = vcombine.low %v180_v50, %v180_v50  ;;  %s2844_s8 = scalar_lea.hbm %s2890_s2, %s1941_s23 }
  0x69   : > { %1386 = vmatpush1.bf16.msra.mxu1 %v2050_v18  ;;  %v2096_v52 = vld [vmem:[%s2617_s7 + $0x3c4] ss:$8 sps:$4 sm:$0xff]   ;;  %v2099_v55 = vld [vmem:[%s2617_s7 + $0x3c0] ss:$8 sps:$4 sm:$0xff]   ;;  %v2100_v56 = vld [vmem:[%s2617_s7 + $0xd4] ss:$8 sps:$4 sm:$0xff]  }
  0x6a   : > { %1509 = vmatpush1.bf16.msra.mxu0 %v2051_v19  ;;  %1387 = vmatprep.subr.bf16.mxu1 %v2052_v20  ;;  %v2102_v57 = vld [vmem:[%s2617_s7 + $0x3d4] ss:$8 sps:$4 sm:$0xff]   ;;  %v2104_v58 = vld [vmem:[%s2617_s7 + $0xd0] ss:$8 sps:$4 sm:$0xff]   ;;  %v2106_v60 = vld [vmem:[%s2617_s7 + $0xe4] ss:$8 sps:$4 sm:$0xff]  }
  0x6b   : > { %1510 = vmatprep.subr.bf16.mxu0 %v2054_v21  ;;  %1409 = vmatprep.mubr.bf16.mxu1 %v1732_v48  ;;  %v2105_v59 = vld [vmem:[%s2617_s7 + $0x3d0] ss:$8 sps:$4 sm:$0xff]   ;;  %v2108_v61 = vld [vmem:[%s2617_s7 + $0x3e4] ss:$8 sps:$4 sm:$0xff]   ;;  %v2110_v62 = vld [vmem:[%s2617_s7 + $0xe0] ss:$8 sps:$4 sm:$0xff]  }
  0x6c   : > { %1532 = vmatprep.mubr.bf16.mxu0 %v1738_v53  ;;  %v2111_v63 = vld [vmem:[%s2617_s7 + $0x3e0] ss:$8 sps:$4 sm:$0xff]   ;;  %v2112_v0 = vld [vmem:[%s2617_s7 + $0xf4] ss:$8 sps:$4 sm:$0xff]   ;;  %v2116_v2 = vld [vmem:[%s2617_s7 + $0xf0] ss:$8 sps:$4 sm:$0xff]  }
  0x6d   : > { %1388 = vmatpush1.bf16.msra.mxu1 %v2056_v22  ;;  %v2114_v1 = vld [vmem:[%s2617_s7 + $0x3f4] ss:$8 sps:$4 sm:$0xff]   ;;  %v2117_v3 = vld [vmem:[%s2617_s7 + $0x3f0] ss:$8 sps:$4 sm:$0xff]   ;;  %v2122_v4 = vld [vmem:[%s2617_s7 + $0x104] ss:$8 sps:$4 sm:$0xff]  }
  0x6e   : > { %1511 = vmatpush1.bf16.msra.mxu0 %v2057_v23  ;;  %1389 = vmatprep.subr.bf16.mxu1 %v2058_v24  ;;  %v2127_v5 = vld [vmem:[%s2617_s7 + $0x404] ss:$8 sps:$4 sm:$0xff]   ;;  %v2120_v8 = vld [vmem:[%s2617_s7 + $0x100] ss:$8 sps:$4 sm:$0xff]   ;;  %v2130_v10 = vld [vmem:[%s2617_s7 + $0x114] ss:$8 sps:$4 sm:$0xff]  }
  0x6f   : > { %1512 = vmatprep.subr.bf16.mxu0 %v2060_v25  ;;  %v2125_v9 = vld [vmem:[%s2617_s7 + $0x400] ss:$8 sps:$4 sm:$0xff]   ;;  %v2133_v11 = vld [vmem:[%s2617_s7 + $0x414] ss:$8 sps:$4 sm:$0xff]   ;;  %v2128_v12 = vld [vmem:[%s2617_s7 + $0x110] ss:$8 sps:$4 sm:$0xff]  }
  0x70   : > { %v2131_v13 = vld [vmem:[%s2617_s7 + $0x410] ss:$8 sps:$4 sm:$0xff]   ;;  %v2136_v14 = vld [vmem:[%s2617_s7 + $0x124] ss:$8 sps:$4 sm:$0xff]   ;;  %v2134_v16 = vld [vmem:[%s2617_s7 + $0x120] ss:$8 sps:$4 sm:$0xff]  }
  0x71   : > { %1390 = vmatpush1.bf16.msra.mxu1 %v2062_v26  ;;  %v2139_v15 = vld [vmem:[%s2617_s7 + $0x424] ss:$8 sps:$4 sm:$0xff]   ;;  %v2137_v17 = vld [vmem:[%s2617_s7 + $0x420] ss:$8 sps:$4 sm:$0xff]   ;;  %v2142_v18 = vld [vmem:[%s2617_s7 + $0x134] ss:$8 sps:$4 sm:$0xff]  }
  0x72   : > { %1513 = vmatpush1.bf16.msra.mxu0 %v2063_v27  ;;  %1391 = vmatprep.subr.bf16.mxu1 %v2064_v28  ;;  %v2145_v19 = vld [vmem:[%s2617_s7 + $0x434] ss:$8 sps:$4 sm:$0xff]   ;;  %v2140_v20 = vld [vmem:[%s2617_s7 + $0x130] ss:$8 sps:$4 sm:$0xff]   ;;  %v2148_v22 = vld [vmem:[%s2617_s7 + $0x144] ss:$8 sps:$4 sm:$0xff]  }
  0x73   : > { %1514 = vmatprep.subr.bf16.mxu0 %v2066_v29  ;;  %v2143_v21 = vld [vmem:[%s2617_s7 + $0x430] ss:$8 sps:$4 sm:$0xff]   ;;  %v2151_v23 = vld [vmem:[%s2617_s7 + $0x444] ss:$8 sps:$4 sm:$0xff]   ;;  %v2146_v24 = vld [vmem:[%s2617_s7 + $0x140] ss:$8 sps:$4 sm:$0xff]  }
  0x74   : > { %v2149_v25 = vld [vmem:[%s2617_s7 + $0x440] ss:$8 sps:$4 sm:$0xff]   ;;  %v2154_v26 = vld [vmem:[%s2617_s7 + $0x154] ss:$8 sps:$4 sm:$0xff]   ;;  %v2152_v28 = vld [vmem:[%s2617_s7 + $0x150] ss:$8 sps:$4 sm:$0xff]  }
  0x75   : > { %1392 = vmatpush1.bf16.msra.mxu1 %v2068_v30  ;;  %v2157_v27 = vld [vmem:[%s2617_s7 + $0x454] ss:$8 sps:$4 sm:$0xff]   ;;  %v2155_v29 = vld [vmem:[%s2617_s7 + $0x450] ss:$8 sps:$4 sm:$0xff]   ;;  %v2160_v30 = vld [vmem:[%s2617_s7 + $0x164] ss:$8 sps:$4 sm:$0xff]  }
  0x76   : > { %1515 = vmatpush1.bf16.msra.mxu0 %v2069_v31  ;;  %1393 = vmatprep.subr.bf16.mxu1 %v2070_v32  ;;  %v2163_v31 = vld [vmem:[%s2617_s7 + $0x464] ss:$8 sps:$4 sm:$0xff]   ;;  %v2713_v32 = vld [vmem:[#allocation2 + $0x8] sm:$0xff]  ;;  %v2185_v53 = vld [vmem:[%s2617_s7 + $0x4a0] ss:$8 sps:$4 sm:$0xff]   ;;  %s1640_s30 = sshll.u32 %s174_s28, 4  ;;  %s2846_s30 = int_to_ptr.vmem [resolvable:$true] %s1640_s30 }
  0x77   : > { %1516 = vmatprep.subr.bf16.mxu0 %v2072_v33  ;;  %v2158_v33 = vld [vmem:[%s2617_s7 + $0x160] ss:$8 sps:$4 sm:$0xff]   ;;  %v2178_v46 = vld [vmem:[%s2617_s7 + $0x194] ss:$8 sps:$4 sm:$0xff]   ;;  %v2176_v48 = vld [vmem:[%s2617_s7 + $0x190] ss:$8 sps:$4 sm:$0xff]  }
  0x78   : > { %v2184_v50 = vld [vmem:[%s2617_s7 + $0x1a4] ss:$8 sps:$4 sm:$0xff]   ;;  %s1626_s13 = scalar_lea.sflag [#allocation4], %s2613_s6  ;;  %s2380_s14 = scalar_lea.vmem %s2846_s30, 256 }
  0x79   : > { %1394 = vmatpush1.bf16.msra.mxu1 %v2074_v34  ;;  %v2161_v34 = vld [vmem:[%s2617_s7 + $0x460] ss:$8 sps:$4 sm:$0xff]   ;;  %p2381_p9 = scmp.ne.s32.totalorder %s2846_s30, %s2380_s14  ;;  %p2909_p10 = scmp.ne.s32.totalorder %s2898_s21, 0 }
  0x7a   : > { %1517 = vmatpush1.bf16.msra.mxu0 %v2075_v35  ;;  %1395 = vmatprep.subr.bf16.mxu1 %v2076_v36  ;;  %v1734_v35 = vcombine.high %v2713_v32, %v2713_v32  ;;  %v2719_v36 = vld [vmem:[#allocation2 + $0x20] sm:$0xff]  ;;  %s2457_s27 = smov [#allocation7]  }
  0x7b   : > { %1518 = vmatprep.subr.bf16.mxu0 %v2078_v37  ;;  %v2166_v37 = vld [vmem:[%s2617_s7 + $0x174] ss:$8 sps:$4 sm:$0xff]   ;;  %p2382_p2 = pnand %p2381_p9, %p2909_p10  ;;  %s2384_s16 = sshll.u32 %s2457_s27, 4  ;;  %s2385_s16 = int_to_ptr.vmem [resolvable:$false] %s2384_s16 }
  0x7c   : > { %s2386_s17 = scalar_lea.vmem %s2385_s16, 512  ;;  %p2387_p5 = scmp.lt.s32.totalorder %s2846_s30, %s2385_s16 }
  0x7d   : > { %1396 = vmatpush1.bf16.msra.mxu1 %v2080_v38  ;;  %v1740_v38 = vcombine.high %v2719_v36, %v2719_v36  ;;  %p2383_p4 = pneg %p2382_p2  ;;  %p2388_p0 = scmp.lt.s32.totalorder %s2386_s17, %s2380_s14 }
  0x7e   : > { %1519 = vmatpush1.bf16.msra.mxu0 %v2081_v39  ;;  %1397 = vmatprep.subr.bf16.mxu1 %v2082_v40  ;;  %v2169_v39 = vld [vmem:[%s2617_s7 + $0x474] ss:$8 sps:$4 sm:$0xff]   ;;  %v2164_v40 = vld [vmem:[%s2617_s7 + $0x170] ss:$8 sps:$4 sm:$0xff]  }
  0x7f   : > { %1520 = vmatprep.subr.bf16.mxu0 %v2084_v41  ;;  %v2167_v41 = vld [vmem:[%s2617_s7 + $0x470] ss:$8 sps:$4 sm:$0xff]   ;;  %p2389_p6 = por %p2388_p0, %p2387_p5 }
  0x81   : > { %1398 = vmatpush1.bf16.msra.mxu1 %v2086_v42  ;;  %v2172_v42 = vld [vmem:[%s2617_s7 + $0x184] ss:$8 sps:$4 sm:$0xff]   ;;  %p2390_p13 = pnand %p2389_p6, %p2383_p4 }
  0x82   : > { %1521 = vmatpush1.bf16.msra.mxu0 %v2087_v43  ;;  %1399 = vmatprep.subr.bf16.mxu1 %v2088_v44  ;;  %v2175_v43 = vld [vmem:[%s2617_s7 + $0x484] ss:$8 sps:$4 sm:$0xff]   ;;  %v2170_v44 = vld [vmem:[%s2617_s7 + $0x180] ss:$8 sps:$4 sm:$0xff]  }
  0x83   : > { %1522 = vmatprep.subr.bf16.mxu0 %v2090_v45  ;;  %v2173_v45 = vld [vmem:[%s2617_s7 + $0x480] ss:$8 sps:$4 sm:$0xff]  }
  0x85   : > { %1400 = vmatpush1.bf16.msra.mxu1 %v2092_v47  ;;  %v2181_v47 = vld [vmem:[%s2617_s7 + $0x494] ss:$8 sps:$4 sm:$0xff]  }
  0x86   : > { %1523 = vmatpush1.bf16.msra.mxu0 %v2093_v49  ;;  %1401 = vmatprep.subr.bf16.mxu1 %v2094_v51  ;;  %v2179_v49 = vld [vmem:[%s2617_s7 + $0x490] ss:$8 sps:$4 sm:$0xff]   ;;  %v2187_v51 = vld [vmem:[%s2617_s7 + $0x4a4] ss:$8 sps:$4 sm:$0xff]  }
  0x87   : > { %1524 = vmatprep.subr.bf16.mxu0 %v2096_v52  ;;  %v2182_v52 = vld [vmem:[%s2617_s7 + $0x1a0] ss:$8 sps:$4 sm:$0xff]  }
  0x89   : > { %1402 = vmatpush1.bf16.msra.mxu1 %v2098_v54  ;;  %v2190_v54 = vld [vmem:[%s2617_s7 + $0x1b4] ss:$8 sps:$4 sm:$0xff]  }
  0x8a   : > { %1525 = vmatpush1.bf16.msra.mxu0 %v2099_v55  ;;  %1403 = vmatprep.subr.bf16.mxu1 %v2100_v56  ;;  %v2193_v55 = vld [vmem:[%s2617_s7 + $0x4b4] ss:$8 sps:$4 sm:$0xff]   ;;  %v2188_v56 = vld [vmem:[%s2617_s7 + $0x1b0] ss:$8 sps:$4 sm:$0xff]  }
  0x8b   : > { %1526 = vmatprep.subr.bf16.mxu0 %v2102_v57  ;;  %v2191_v57 = vld [vmem:[%s2617_s7 + $0x4b0] ss:$8 sps:$4 sm:$0xff]  }
  0x8d   : > { %1404 = vmatpush1.bf16.msra.mxu1 %v2104_v58  ;;  %v2196_v58 = vld [vmem:[%s2617_s7 + $0x1c4] ss:$8 sps:$4 sm:$0xff]  }
  0x8e   : > { %1527 = vmatpush1.bf16.msra.mxu0 %v2105_v59  ;;  %1405 = vmatprep.subr.bf16.mxu1 %v2106_v60  ;;  %v2199_v59 = vld [vmem:[%s2617_s7 + $0x4c4] ss:$8 sps:$4 sm:$0xff]   ;;  %v2194_v60 = vld [vmem:[%s2617_s7 + $0x1c0] ss:$8 sps:$4 sm:$0xff]  }
  0x8f   : > { %1528 = vmatprep.subr.bf16.mxu0 %v2108_v61  ;;  %v2197_v61 = vld [vmem:[%s2617_s7 + $0x4c0] ss:$8 sps:$4 sm:$0xff]  }
  0x91   : > { %1406 = vmatpush1.bf16.msra.mxu1 %v2110_v62  ;;  %v2202_v62 = vld [vmem:[%s2617_s7 + $0x1d4] ss:$8 sps:$4 sm:$0xff]  }
  0x92   : > { %1529 = vmatpush1.bf16.msra.mxu0 %v2111_v63  ;;  %1407 = vmatprep.subr.bf16.mxu1 %v2112_v0  ;;  %v2205_v63 = vld [vmem:[%s2617_s7 + $0x4d4] ss:$8 sps:$4 sm:$0xff]   ;;  %v2200_v0 = vld [vmem:[%s2617_s7 + $0x1d0] ss:$8 sps:$4 sm:$0xff]  }
  0x93   : > { %1530 = vmatprep.subr.bf16.mxu0 %v2114_v1  ;;  %v2203_v1 = vld [vmem:[%s2617_s7 + $0x4d0] ss:$8 sps:$4 sm:$0xff]  }
  0x95   : > { %1408 = vmatpush1.bf16.msra.mxu1 %v2116_v2  ;;  %v2208_v2 = vld [vmem:[%s2617_s7 + $0x1e4] ss:$8 sps:$4 sm:$0xff]  }
  0x96   : > { %1531 = vmatpush1.bf16.msra.mxu0 %v2117_v3  ;;  %1418 = vmatprep.subr.bf16.mxu1 %v2122_v4  ;;  %v2211_v3 = vld [vmem:[%s2617_s7 + $0x4e4] ss:$8 sps:$4 sm:$0xff]   ;;  %v2206_v4 = vld [vmem:[%s2617_s7 + $0x1e0] ss:$8 sps:$4 sm:$0xff]  }
  0x97   : > { %1541 = vmatprep.subr.bf16.mxu0 %v2127_v5  ;;  %v2209_v5 = vld [vmem:[%s2617_s7 + $0x4e0] ss:$8 sps:$4 sm:$0xff]  }
  0x98   : > { %1410 = vmatmul.mubr.bf16.vlgmr.msra.gmra.mrb[0].mxu1 %v1731_v6  ;;  %v2214_v6 = vld [vmem:[%s2617_s7 + $0x1f4] ss:$8 sps:$4 sm:$0xff]  }
  0x99   : > { %1533 = vmatmul.mubr.bf16.vlgmr.msra.gmra.mrb[0].mxu0 %v1737_v7  ;;  %1419 = vmatpush1.bf16.msra.mxu1 %v2120_v8  ;;  %v2217_v7 = vld [vmem:[%s2617_s7 + $0x4f4] ss:$8 sps:$4 sm:$0xff]   ;;  %v2212_v8 = vld [vmem:[%s2617_s7 + $0x1f0] ss:$8 sps:$4 sm:$0xff]  }
  0x9a   : > { %1542 = vmatpush1.bf16.msra.mxu0 %v2125_v9  ;;  %1420 = vmatprep.subr.bf16.mxu1 %v2130_v10  ;;  %v2215_v9 = vld [vmem:[%s2617_s7 + $0x4f0] ss:$8 sps:$4 sm:$0xff]   ;;  %v2222_v10 = vld [vmem:[%s2617_s7 + $0x204] ss:$8 sps:$4 sm:$0xff]  }
  0x9b   : > { %1543 = vmatprep.subr.bf16.mxu0 %v2133_v11  ;;  %1450 = vmatprep.mubr.bf16.mxu1 %v1734_v35  ;;  %v2227_v11 = vld [vmem:[%s2617_s7 + $0x504] ss:$8 sps:$4 sm:$0xff]   ;;  %v2249_v35 = vld [vmem:[%s2617_s7 + $0x540] ss:$8 sps:$4 sm:$0xff]  }
  0x9c   : > { %1573 = vmatprep.mubr.bf16.mxu0 %v1740_v38  ;;  %v2252_v38 = vld [vmem:[%s2617_s7 + $0x250] ss:$8 sps:$4 sm:$0xff]  }
  0x9d   : > { %1421 = vmatpush1.bf16.msra.mxu1 %v2128_v12  ;;  %v1733_v12 = vcombine.low %v2713_v32, %v2713_v32  ;;  %v2248_v32 = vld [vmem:[%s2617_s7 + $0x244] ss:$8 sps:$4 sm:$0xff]  }
  0x9e   : > { %1544 = vmatpush1.bf16.msra.mxu0 %v2131_v13  ;;  %1422 = vmatprep.subr.bf16.mxu1 %v2136_v14  ;;  %v2220_v13 = vld [vmem:[%s2617_s7 + $0x200] ss:$8 sps:$4 sm:$0xff]   ;;  %v1739_v14 = vcombine.low %v2719_v36, %v2719_v36  ;;  %v2254_v36 = vld [vmem:[%s2617_s7 + $0x254] ss:$8 sps:$4 sm:$0xff]  }
  0x9f   : > { %1545 = vmatprep.subr.bf16.mxu0 %v2139_v15  ;;  %v2225_v15 = vld [vmem:[%s2617_s7 + $0x500] ss:$8 sps:$4 sm:$0xff]  }
  0xa1   : > { %1423 = vmatpush1.bf16.msra.mxu1 %v2134_v16  ;;  %v2230_v16 = vld [vmem:[%s2617_s7 + $0x214] ss:$8 sps:$4 sm:$0xff]  }
  0xa2   : > { %1546 = vmatpush1.bf16.msra.mxu0 %v2137_v17  ;;  %1424 = vmatprep.subr.bf16.mxu1 %v2142_v18  ;;  %v2233_v17 = vld [vmem:[%s2617_s7 + $0x514] ss:$8 sps:$4 sm:$0xff]   ;;  %v2769_v18 = vld [vmem:[#allocation2 + $0x10] sm:$0xff] }
  0xa3   : > { %1547 = vmatprep.subr.bf16.mxu0 %v2145_v19  ;;  %v2771_v19 = vld [vmem:[#allocation2 + $0x28] sm:$0xff] }
  0xa5   : > { %1425 = vmatpush1.bf16.msra.mxu1 %v2140_v20  ;;  %v1736_v20 = vcombine.high %v2769_v18, %v2769_v18 }
  0xa6   : > { %1548 = vmatpush1.bf16.msra.mxu0 %v2143_v21  ;;  %1426 = vmatprep.subr.bf16.mxu1 %v2148_v22  ;;  %v1742_v21 = vcombine.high %v2771_v19, %v2771_v19  ;;  %v2228_v22 = vld [vmem:[%s2617_s7 + $0x210] ss:$8 sps:$4 sm:$0xff]  }
  0xa7   : > { %1549 = vmatprep.subr.bf16.mxu0 %v2151_v23  ;;  %v2231_v23 = vld [vmem:[%s2617_s7 + $0x510] ss:$8 sps:$4 sm:$0xff]  }
  0xa9   : > { %1427 = vmatpush1.bf16.msra.mxu1 %v2146_v24  ;;  %v2236_v24 = vld [vmem:[%s2617_s7 + $0x224] ss:$8 sps:$4 sm:$0xff]  }
  0xaa   : > { %1550 = vmatpush1.bf16.msra.mxu0 %v2149_v25  ;;  %1428 = vmatprep.subr.bf16.mxu1 %v2154_v26  ;;  %v2239_v25 = vld [vmem:[%s2617_s7 + $0x524] ss:$8 sps:$4 sm:$0xff]   ;;  %v2234_v26 = vld [vmem:[%s2617_s7 + $0x220] ss:$8 sps:$4 sm:$0xff]  }
  0xab   : > { %1551 = vmatprep.subr.bf16.mxu0 %v2157_v27  ;;  %v2237_v27 = vld [vmem:[%s2617_s7 + $0x520] ss:$8 sps:$4 sm:$0xff]  }
  0xad   : > { %1429 = vmatpush1.bf16.msra.mxu1 %v2152_v28  ;;  %v2242_v28 = vld [vmem:[%s2617_s7 + $0x234] ss:$8 sps:$4 sm:$0xff]  }
  0xae   : > { %1552 = vmatpush1.bf16.msra.mxu0 %v2155_v29  ;;  %1430 = vmatprep.subr.bf16.mxu1 %v2160_v30  ;;  %v2245_v29 = vld [vmem:[%s2617_s7 + $0x534] ss:$8 sps:$4 sm:$0xff]   ;;  %v2240_v30 = vld [vmem:[%s2617_s7 + $0x230] ss:$8 sps:$4 sm:$0xff]  }
  0xaf   : > { %1553 = vmatprep.subr.bf16.mxu0 %v2163_v31  ;;  %v2243_v31 = vld [vmem:[%s2617_s7 + $0x530] ss:$8 sps:$4 sm:$0xff]  }
  0xb1   : > { %1431 = vmatpush1.bf16.msra.mxu1 %v2158_v33  ;;  %v2251_v33 = vld [vmem:[%s2617_s7 + $0x544] ss:$8 sps:$4 sm:$0xff]  }
  0xb2   : > { %1554 = vmatpush1.bf16.msra.mxu0 %v2161_v34  ;;  %1432 = vmatprep.subr.bf16.mxu1 %v2166_v37  ;;  %v2246_v34 = vld [vmem:[%s2617_s7 + $0x240] ss:$8 sps:$4 sm:$0xff]   ;;  %v2257_v37 = vld [vmem:[%s2617_s7 + $0x554] ss:$8 sps:$4 sm:$0xff]  }
  0xb3   : > { %1555 = vmatprep.subr.bf16.mxu0 %v2169_v39  ;;  %v2255_v39 = vld [vmem:[%s2617_s7 + $0x550] ss:$8 sps:$4 sm:$0xff]  }
  0xb5   : > { %1433 = vmatpush1.bf16.msra.mxu1 %v2164_v40  ;;  %v2260_v40 = vld [vmem:[%s2617_s7 + $0x264] ss:$8 sps:$4 sm:$0xff]  }
  0xb6   : > { %1556 = vmatpush1.bf16.msra.mxu0 %v2167_v41  ;;  %1434 = vmatprep.subr.bf16.mxu1 %v2172_v42  ;;  %v2263_v41 = vld [vmem:[%s2617_s7 + $0x564] ss:$8 sps:$4 sm:$0xff]   ;;  %v2258_v42 = vld [vmem:[%s2617_s7 + $0x260] ss:$8 sps:$4 sm:$0xff]  }
  0xb7   : > { %1557 = vmatprep.subr.bf16.mxu0 %v2175_v43  ;;  %v2261_v43 = vld [vmem:[%s2617_s7 + $0x560] ss:$8 sps:$4 sm:$0xff]  }
  0xb9   : > { %1435 = vmatpush1.bf16.msra.mxu1 %v2170_v44  ;;  %v2266_v44 = vld [vmem:[%s2617_s7 + $0x274] ss:$8 sps:$4 sm:$0xff]  }
  0xba   : > { %1558 = vmatpush1.bf16.msra.mxu0 %v2173_v45  ;;  %1436 = vmatprep.subr.bf16.mxu1 %v2178_v46  ;;  %v2269_v45 = vld [vmem:[%s2617_s7 + $0x574] ss:$8 sps:$4 sm:$0xff]   ;;  %v2264_v46 = vld [vmem:[%s2617_s7 + $0x270] ss:$8 sps:$4 sm:$0xff]  }
  0xbb   : > { %1559 = vmatprep.subr.bf16.mxu0 %v2181_v47  ;;  %v2267_v47 = vld [vmem:[%s2617_s7 + $0x570] ss:$8 sps:$4 sm:$0xff]  }
  0xbd   : > { %1437 = vmatpush1.bf16.msra.mxu1 %v2176_v48  ;;  %v2272_v48 = vld [vmem:[%s2617_s7 + $0x284] ss:$8 sps:$4 sm:$0xff]  }
  0xbe   : > { %1560 = vmatpush1.bf16.msra.mxu0 %v2179_v49  ;;  %1438 = vmatprep.subr.bf16.mxu1 %v2184_v50  ;;  %v2275_v49 = vld [vmem:[%s2617_s7 + $0x584] ss:$8 sps:$4 sm:$0xff]   ;;  %v2270_v50 = vld [vmem:[%s2617_s7 + $0x280] ss:$8 sps:$4 sm:$0xff]  }
  0xbf   : > { %1561 = vmatprep.subr.bf16.mxu0 %v2187_v51  ;;  %v2273_v51 = vld [vmem:[%s2617_s7 + $0x580] ss:$8 sps:$4 sm:$0xff]  }
  0xc1   : > { %1439 = vmatpush1.bf16.msra.mxu1 %v2182_v52  ;;  %v2278_v52 = vld [vmem:[%s2617_s7 + $0x294] ss:$8 sps:$4 sm:$0xff]  }
  0xc2   : > { %1562 = vmatpush1.bf16.msra.mxu0 %v2185_v53  ;;  %1440 = vmatprep.subr.bf16.mxu1 %v2190_v54  ;;  %v2281_v53 = vld [vmem:[%s2617_s7 + $0x594] ss:$8 sps:$4 sm:$0xff]   ;;  %v2276_v54 = vld [vmem:[%s2617_s7 + $0x290] ss:$8 sps:$4 sm:$0xff]  }
  0xc3   : > { %1563 = vmatprep.subr.bf16.mxu0 %v2193_v55  ;;  %v2279_v55 = vld [vmem:[%s2617_s7 + $0x590] ss:$8 sps:$4 sm:$0xff]  }
  0xc5   : > { %1441 = vmatpush1.bf16.msra.mxu1 %v2188_v56  ;;  %v2284_v56 = vld [vmem:[%s2617_s7 + $0x2a4] ss:$8 sps:$4 sm:$0xff]  }
  0xc6   : > { %1564 = vmatpush1.bf16.msra.mxu0 %v2191_v57  ;;  %1442 = vmatprep.subr.bf16.mxu1 %v2196_v58  ;;  %v2287_v57 = vld [vmem:[%s2617_s7 + $0x5a4] ss:$8 sps:$4 sm:$0xff]   ;;  %v2282_v58 = vld [vmem:[%s2617_s7 + $0x2a0] ss:$8 sps:$4 sm:$0xff]  }
  0xc7   : > { %1565 = vmatprep.subr.bf16.mxu0 %v2199_v59  ;;  %v2285_v59 = vld [vmem:[%s2617_s7 + $0x5a0] ss:$8 sps:$4 sm:$0xff]  }
  0xc9   : > { %1443 = vmatpush1.bf16.msra.mxu1 %v2194_v60  ;;  %v2290_v60 = vld [vmem:[%s2617_s7 + $0x2b4] ss:$8 sps:$4 sm:$0xff]  }
  0xca   : > { %1566 = vmatpush1.bf16.msra.mxu0 %v2197_v61  ;;  %1444 = vmatprep.subr.bf16.mxu1 %v2202_v62  ;;  %v2293_v61 = vld [vmem:[%s2617_s7 + $0x5b4] ss:$8 sps:$4 sm:$0xff]   ;;  %v2288_v62 = vld [vmem:[%s2617_s7 + $0x2b0] ss:$8 sps:$4 sm:$0xff]  }
  0xcb   : > { %1567 = vmatprep.subr.bf16.mxu0 %v2205_v63  ;;  %v2291_v63 = vld [vmem:[%s2617_s7 + $0x5b0] ss:$8 sps:$4 sm:$0xff]  }
  0xcd   : > { %1445 = vmatpush1.bf16.msra.mxu1 %v2200_v0  ;;  %v2296_v0 = vld [vmem:[%s2617_s7 + $0x2c4] ss:$8 sps:$4 sm:$0xff]  }
  0xce   : > { %1568 = vmatpush1.bf16.msra.mxu0 %v2203_v1  ;;  %1446 = vmatprep.subr.bf16.mxu1 %v2208_v2  ;;  %v2299_v1 = vld [vmem:[%s2617_s7 + $0x5c4] ss:$8 sps:$4 sm:$0xff]   ;;  %v2294_v2 = vld [vmem:[%s2617_s7 + $0x2c0] ss:$8 sps:$4 sm:$0xff]  }
  0xcf   : > { %1569 = vmatprep.subr.bf16.mxu0 %v2211_v3  ;;  %v2297_v3 = vld [vmem:[%s2617_s7 + $0x5c0] ss:$8 sps:$4 sm:$0xff]  }
  0xd1   : > { %1447 = vmatpush1.bf16.msra.mxu1 %v2206_v4  ;;  %v2302_v4 = vld [vmem:[%s2617_s7 + $0x2d4] ss:$8 sps:$4 sm:$0xff]  }
  0xd2   : > { %1570 = vmatpush1.bf16.msra.mxu0 %v2209_v5  ;;  %1448 = vmatprep.subr.bf16.mxu1 %v2214_v6  ;;  %v2305_v5 = vld [vmem:[%s2617_s7 + $0x5d4] ss:$8 sps:$4 sm:$0xff]   ;;  %v2300_v6 = vld [vmem:[%s2617_s7 + $0x2d0] ss:$8 sps:$4 sm:$0xff]  }
  0xd3   : > { %1571 = vmatprep.subr.bf16.mxu0 %v2217_v7  ;;  %v2303_v7 = vld [vmem:[%s2617_s7 + $0x5d0] ss:$8 sps:$4 sm:$0xff]  }
  0xd5   : > { %1449 = vmatpush1.bf16.msra.mxu1 %v2212_v8  ;;  %v2308_v8 = vld [vmem:[%s2617_s7 + $0x2e4] ss:$8 sps:$4 sm:$0xff]  }
  0xd6   : > { %1572 = vmatpush1.bf16.msra.mxu0 %v2215_v9  ;;  %1459 = vmatprep.subr.bf16.mxu1 %v2222_v10  ;;  %v2311_v9 = vld [vmem:[%s2617_s7 + $0x5e4] ss:$8 sps:$4 sm:$0xff]   ;;  %v2306_v10 = vld [vmem:[%s2617_s7 + $0x2e0] ss:$8 sps:$4 sm:$0xff]  }
  0xd7   : > { %1582 = vmatprep.subr.bf16.mxu0 %v2227_v11  ;;  %v2309_v11 = vld [vmem:[%s2617_s7 + $0x5e0] ss:$8 sps:$4 sm:$0xff]  }
  0xd8   : > { %1451 = vmatmul.mubr.bf16.vlgmr.msra.gmra.mrb[0].mxu1 %v1733_v12  ;;  %v2314_v12 = vld [vmem:[%s2617_s7 + $0x2f4] ss:$8 sps:$4 sm:$0xff]  }
  0xd9   : > { %1574 = vmatmul.mubr.bf16.vlgmr.msra.gmra.mrb[0].mxu0 %v1739_v14  ;;  %1460 = vmatpush1.bf16.msra.mxu1 %v2220_v13  ;;  %v2317_v13 = vld [vmem:[%s2617_s7 + $0x5f4] ss:$8 sps:$4 sm:$0xff]   ;;  %v2312_v14 = vld [vmem:[%s2617_s7 + $0x2f0] ss:$8 sps:$4 sm:$0xff]  }
  0xda   : > { %1583 = vmatpush1.bf16.msra.mxu0 %v2225_v15  ;;  %1461 = vmatprep.subr.bf16.mxu1 %v2230_v16  ;;  %v2315_v15 = vld [vmem:[%s2617_s7 + $0x5f0] ss:$8 sps:$4 sm:$0xff]   ;;  %v1735_v16 = vcombine.low %v2769_v18, %v2769_v18 }
  0xdb   : > { %1584 = vmatprep.subr.bf16.mxu0 %v2233_v17  ;;  %1491 = vmatprep.mubr.bf16.mxu1 %v1736_v20  ;;  %v1741_v17 = vcombine.low %v2771_v19, %v2771_v19 }
  0xdc   : > { %1614 = vmatprep.mubr.bf16.mxu0 %v1742_v21 }
  0xdd   : > { %1462 = vmatpush1.bf16.msra.mxu1 %v2228_v22 }
  0xde   : > { %1585 = vmatpush1.bf16.msra.mxu0 %v2231_v23  ;;  %1463 = vmatprep.subr.bf16.mxu1 %v2236_v24 }
  0xdf   : > { %1586 = vmatprep.subr.bf16.mxu0 %v2239_v25 }
  0xe1   : > { %1464 = vmatpush1.bf16.msra.mxu1 %v2234_v26 }
  0xe2   : > { %1587 = vmatpush1.bf16.msra.mxu0 %v2237_v27  ;;  %1465 = vmatprep.subr.bf16.mxu1 %v2242_v28 }
  0xe3   : > { %1588 = vmatprep.subr.bf16.mxu0 %v2245_v29 }
  0xe5   : > { %1466 = vmatpush1.bf16.msra.mxu1 %v2240_v30 }
  0xe6   : > { %1589 = vmatpush1.bf16.msra.mxu0 %v2243_v31  ;;  %1467 = vmatprep.subr.bf16.mxu1 %v2248_v32 }
  0xe7   : > { %1590 = vmatprep.subr.bf16.mxu0 %v2251_v33 }
  0xe9   : > { %1468 = vmatpush1.bf16.msra.mxu1 %v2246_v34 }
  0xea   : > { %1591 = vmatpush1.bf16.msra.mxu0 %v2249_v35  ;;  %1469 = vmatprep.subr.bf16.mxu1 %v2254_v36 }
  0xeb   : > { %1592 = vmatprep.subr.bf16.mxu0 %v2257_v37 }
  0xed   : > { %1470 = vmatpush1.bf16.msra.mxu1 %v2252_v38 }
  0xee   : > { %1593 = vmatpush1.bf16.msra.mxu0 %v2255_v39  ;;  %1471 = vmatprep.subr.bf16.mxu1 %v2260_v40 }
  0xef   : > { %1594 = vmatprep.subr.bf16.mxu0 %v2263_v41 }
  0xf1   : > { %1472 = vmatpush1.bf16.msra.mxu1 %v2258_v42 }
  0xf2   : > { %1595 = vmatpush1.bf16.msra.mxu0 %v2261_v43  ;;  %1473 = vmatprep.subr.bf16.mxu1 %v2266_v44 }
  0xf3   : > { %1596 = vmatprep.subr.bf16.mxu0 %v2269_v45 }
  0xf5   : > { %1474 = vmatpush1.bf16.msra.mxu1 %v2264_v46 }
  0xf6   : > { %1597 = vmatpush1.bf16.msra.mxu0 %v2267_v47  ;;  %1475 = vmatprep.subr.bf16.mxu1 %v2272_v48 }
  0xf7   : > { %1598 = vmatprep.subr.bf16.mxu0 %v2275_v49 }
  0xf9   : > { %1476 = vmatpush1.bf16.msra.mxu1 %v2270_v50 }
  0xfa   : > { %1599 = vmatpush1.bf16.msra.mxu0 %v2273_v51  ;;  %1477 = vmatprep.subr.bf16.mxu1 %v2278_v52 }
  0xfb   : > { %1600 = vmatprep.subr.bf16.mxu0 %v2281_v53 }
  0xfd   : > { %1478 = vmatpush1.bf16.msra.mxu1 %v2276_v54 }
  0xfe   : > { %1601 = vmatpush1.bf16.msra.mxu0 %v2279_v55  ;;  %1479 = vmatprep.subr.bf16.mxu1 %v2284_v56 }
  0xff   : > { %1602 = vmatprep.subr.bf16.mxu0 %v2287_v57 }
 0x101   : > { %1480 = vmatpush1.bf16.msra.mxu1 %v2282_v58 }
 0x102   : > { %1603 = vmatpush1.bf16.msra.mxu0 %v2285_v59  ;;  %1481 = vmatprep.subr.bf16.mxu1 %v2290_v60 }
 0x103   : > { %1604 = vmatprep.subr.bf16.mxu0 %v2293_v61 }
 0x105   : > { %1482 = vmatpush1.bf16.msra.mxu1 %v2288_v62 }
 0x106   : > { %1605 = vmatpush1.bf16.msra.mxu0 %v2291_v63  ;;  %1483 = vmatprep.subr.bf16.mxu1 %v2296_v0 }
 0x107   : > { %1606 = vmatprep.subr.bf16.mxu0 %v2299_v1 }
 0x109   : > { %1484 = vmatpush1.bf16.msra.mxu1 %v2294_v2 }
 0x10a   : > { %1607 = vmatpush1.bf16.msra.mxu0 %v2297_v3  ;;  %1485 = vmatprep.subr.bf16.mxu1 %v2302_v4 }
 0x10b   : > { %1608 = vmatprep.subr.bf16.mxu0 %v2305_v5 }
 0x10d   : > { %1486 = vmatpush1.bf16.msra.mxu1 %v2300_v6 }
 0x10e   : > { %1609 = vmatpush1.bf16.msra.mxu0 %v2303_v7  ;;  %1487 = vmatprep.subr.bf16.mxu1 %v2308_v8 }
 0x10f   : > { %1610 = vmatprep.subr.bf16.mxu0 %v2311_v9 }
 0x111   : > { %1488 = vmatpush1.bf16.msra.mxu1 %v2306_v10 }
 0x112   : > { %1611 = vmatpush1.bf16.msra.mxu0 %v2309_v11  ;;  %1489 = vmatprep.subr.bf16.mxu1 %v2314_v12 }
 0x113   : > { %1612 = vmatprep.subr.bf16.mxu0 %v2317_v13 }
 0x115   : > { %1490 = vmatpush1.bf16.msra.mxu1 %v2312_v14 }
 0x116   : > { %1613 = vmatpush1.bf16.msra.mxu0 %v2315_v15 }
 0x118   : > { %1492 = vmatmul.mubr.bf16.vlgmr.msra.gmra.mrb[0].mxu1 %v1735_v16 }
 0x119   : > { %1615 = vmatmul.mubr.bf16.vlgmr.msra.gmra.mrb[0].mxu0 %v1741_v17 }
 0x1eb   : > { %v1493_v20 = vpop.f32.mrb[0].mxu1 }
 0x1ec   : > { %v1616_v21 = vpop.f32.mrb[0].mxu0  ;;  %v1495_v23 = vpop.f32.mrb[1].mxu1 }
 0x1ed   : > { %v1942_v22 = vadd.f32 %v1616_v21, %v1493_v20  ;;  %v1618_v24 = vpop.f32.mrb[1].mxu0  ;;  %v1497_v18 = vpop.f32.mrb[2].mxu1 }
 0x1ee   : > { %v1943_v25 = vadd.f32 %v1618_v24, %v1495_v23  ;;  %v1620_v26 = vpop.f32.mrb[2].mxu0  ;;  %v1498_v19 = vpop.f32.mrb[3].mxu1 }
 0x1ef   : > { %1623 = vst [vmem:[%s174_s28] sm:$0xff] %v1942_v22  ;;  %v1621_v27 = vpop.f32.mrb[3].mxu0 }
 0x1f0   : > { %1624 = vst [vmem:[%s174_s28 + $0x8] sm:$0xff] %v1943_v25 }
 0x1f1   : > { %2393 = shalt.err (!%p2390_p13)
}
 0x1f2   : > { %s2394_s19 = scalar_lea.hbm %s2844_s8, 256  ;;  %s2398_s4 = scalar_lea.hbm %s2890_s2, 512 }
 0x1f3   : > { %p2395_p7 = scmp.ne.s32.totalorder %s2844_s8, %s2394_s19  ;;  %p2399_p1 = scmp.lt.u32.totalorder %s2844_s8, %s2890_s2 }
 0x1f4   : > { %p2400_p8 = scmp.lt.u32.totalorder %s2398_s4, %s2394_s19  ;;  %p2402_p9 = scmp.lt.u32.totalorder %s2394_s19, %s2844_s8 }
 0x1f5   : > { %p2396_p3 = pnand %p2395_p7, %p2909_p10 }
 0x1f6   : > { %p2401_p11 = por %p2400_p8, %p2399_p1 }
 0x1f7   : > { %p2397_p12 = pneg %p2396_p3 }
 0x1f8   : > { %p2403_p2 = por %p2402_p9, %p2401_p11 }
 0x1fa   : > { %p2404_p4 = pnand %p2403_p2, %p2397_p12 }
 0x1fc   : > { %2407 = shalt.err (!%p2404_p4)
}
 0x1fd   : > { %1968 = dma.vmem_to_hbm [thread:$0]  (%p2909_p10), %s2846_s30, 256, %s2844_s8, %s1626_s13  }
 0x1fe PF: > { %s1652_s29 = sand.u32 1, %s2438_s9   ;;  %p2910_p5 = scmp.ne.s32.totalorder %s2899_s22, 0 }
 0x1ff   : > { %p2911_p0 = scmp.ge.s32.totalorder %s2450_s12, 2  ;;  %s1653_s7 = scalar_lea.sflag [#allocation4], %s1652_s29 }
 0x201   : > { %p1979_p6 = pnand %p2911_p0, %p2910_p5 }
 0x203   : > { %2433 = dma.done.wait (!%p1979_p6), %s1653_s7, 256  }
 0x204   : > { %2435 = vsyncadd (!%p1979_p6), %s1653_s7, 4294967040  ;;  %p16_p13 = scmp.ge.s32.totalorder %s2498_s15, 4   ;;  %s2912_s9 = smov %s2442_s10 }
 0x205   : > { %s2913_s10 = smov %s2446_s11  ;;  %s2914_s11 = smov %s2510_s18 }
 0x206   : > { %s2915_s12 = smov %s2498_s15  ;;  %18 = sbr.rel (!%p16_p13) target bundleno = 6 (0x6), region = 78 }
 0x20d   :  { %1658 = vsyncpa [#allocation3], 1 }
 0x20e   :  { %1660 = vsyncpa [#allocation3 + $0x1], 1 }
 0x20f   :  { %1661 = vsyncpa [#allocation6], 1 }
 0x210   :  { %1663 = vsyncpa [#allocation6 + $0x1], 1 }
 0x211   :  { %1664 = vsyncpa [#allocation4], 1 }
 0x212   :  { %1666 = vsyncpa [#allocation4 + $0x1], 1 }

</bundles_post_ra>
